<compile_context>
chip_gen: v7x
topology: tpu7x:2x2x1
jax: 0.10.0
libtpu: 0.0.40
codegen_flags: <defaults>
</compile_context>

<pallas_src>
import functools

import jax
import jax.numpy as jnp
import numpy as np
from jax.experimental import pallas as pl
from jax.experimental.pallas import tpu as pltpu


def _loc_block_kernel(x_ref, w_ref, o_ref, *, num_patches, in_channels,
                      filter_size, scale):
    # x_ref: (tn, C_in * D)  flat natural layout, D = P * F
    # w_ref: (P, K, C_out),  K = C_in * F (contraction axis is dim 0 of the RHS)
    # o_ref: (tn, P * C_out) lane-dense output slab, column = p * C_out + o
    d = num_patches * filter_size
    outs = []
    for p_idx in range(num_patches):
        # Gather this patch's K columns: C_in strips of F contiguous lanes,
        # strided by D inside the flat x row (pure VMEM work, no HBM pass).
        strips = [
            x_ref[:, c_idx * d + p_idx * filter_size:
                  c_idx * d + (p_idx + 1) * filter_size]
            for c_idx in range(in_channels)
        ]
        x_p = strips[0] if in_channels == 1 else jnp.concatenate(strips, axis=1)
        w_p = w_ref[p_idx]                                  # (K, C_out)
        y_p = jax.lax.dot_general(                          # (tn, K) @ (K, C_out)
            x_p, w_p,
            dimension_numbers=(((1,), (0,)), ((), ())),
            preferred_element_type=jnp.float32,
        )
        outs.append(y_p)
    y = outs[0] if num_patches == 1 else jnp.concatenate(outs, axis=1)
    o_ref[...] = jnp.maximum(y * scale, 0.0).astype(o_ref.dtype)


def _pick_row_block(n):
    # Largest row tile that divides N (keeps blocks legal: divisible by 8 or
    # equal to the full dim) and gives the MXU a reasonable M dimension.
    for cand in (512, 256, 128, 64, 32, 16, 8):
        if n >= cand and n % cand == 0:
            return cand
    return n


def loc_block_1d_nt(x, w, *, compute_dtype=None):
    """x: (N, C_in, D) f32, w: (1, C_out, C_in, P, F) f32 -> (N, C_out, P) f32."""
    _, c_out, c_in, p, f = w.shape
    n, c_in_x, d = x.shape
    assert c_in_x == c_in and d == p * f, "dimension must equal num_patches * filter_size"
    k = c_in * f
    k_full = c_in * d

    # Activation: free flatten only (no HBM transpose of x).
    x2 = x.reshape(n, k_full)
    # Weight (parameter): one-time rearrangement to (P, K, C_out), K = (c, f).
    wr = w[0].transpose(2, 1, 3, 0).reshape(p, k, c_out)

    if compute_dtype is not None:  # e.g. jnp.bfloat16 on v6e/v7x if accuracy permits
        x2 = x2.astype(compute_dtype)
        wr = wr.astype(compute_dtype)

    scale = 1.0 / float(np.sqrt(f * c_in))

    tn = _pick_row_block(n)
    grid = (n // tn,)

    # VMEM budget guard (double-buffered x/out tiles + resident weight).
    itm = jnp.dtype(x2.dtype).itemsize
    est_vmem = itm * (2 * tn * k_full + 2 * p * k * c_out) + 4 * 2 * tn * p * c_out
    assert est_vmem < 24 * 1024 * 1024, (
        "tile footprint too large for a single VMEM-resident weight; "
        "add a patch/K grid axis (see TODO)")

    cost = pl.CostEstimate(
        flops=2 * n * p * k * c_out,
        transcendentals=0,
        bytes_accessed=itm * (n * k_full + p * k * c_out)
        + jnp.dtype(x.dtype).itemsize * n * p * c_out,
    )

    out = pl.pallas_call(
        functools.partial(
            _loc_block_kernel,
            num_patches=p, in_channels=c_in, filter_size=f, scale=scale),
        out_shape=jax.ShapeDtypeStruct((n, p * c_out), x.dtype),
        grid=grid,
        in_specs=[
            pl.BlockSpec((tn, k_full), lambda i: (i, 0)),
            pl.BlockSpec((p, k, c_out), lambda i: (0, 0, 0)),
        ],
        out_specs=pl.BlockSpec((tn, p * c_out), lambda i: (i, 0)),
        compiler_params=pltpu.CompilerParams(
            dimension_semantics=("parallel",),
            vmem_limit_bytes=32 * 1024 * 1024,
        ),
        cost_estimate=cost,
    )(x2, wr)

    # (N, P*C_out) -> (N, P, C_out) is a free reshape; only the small output
    # array needs a transpose back to the PyTorch (N, C_out, P) layout.
    return jnp.transpose(out.reshape(n, p, c_out), (0, 2, 1))


def _reference(x, w):
    """Pure-JAX reference mirroring the PyTorch forward."""
    _, c_out, c_in, p, f = w.shape
    n = x.shape[0]
    xu = x.reshape(n, c_in, p, f)                       # unfold(2, f, f)
    y = jnp.einsum("ncpf,ocpf->nop", xu, w[0])          # sum over dims [2, 4]
    return jax.nn.relu(y / jnp.sqrt(jnp.float32(f * c_in)))


if __name__ == "__main__":
    # Small deterministic problem consistent with the module's forward:
    # num_points=8, in_channels=4, num_patches=4, filter_size=8 -> dimension=32
    num_points = 8
    in_channels = 4
    num_patches = 4
    filter_size = 8
    out_channels = 16
    dimension = num_patches * filter_size

    key = jax.random.PRNGKey(0)
    kx, kw = jax.random.split(key)
    x = jax.random.normal(kx, (num_points, in_channels, dimension), dtype=jnp.float32)
    # Parameter: torch.randn(1, out_channels, in_channels, num_patches, filter_size)
    w = jax.random.normal(
        kw, (1, out_channels, in_channels, num_patches, filter_size), dtype=jnp.float32
    )

    y = jax.block_until_ready(loc_block_1d_nt(x, w))
    y_ref = jax.block_until_ready(_reference(x, w))

    assert y.shape == (num_points, out_channels, num_patches)
    np.testing.assert_allclose(np.asarray(y), np.asarray(y_ref), rtol=1e-5, atol=1e-5)

    print("KERNEL_OK")
</pallas_src>

<mosaic_0001>
module attributes {stable_mosaic.version = 11 : i64} {
  func.func @_loc_block_kernel(%arg0: i32, %arg1: memref<8x128xf32, #tpu.memory_space<vmem>>, %arg2: memref<4x32x16xf32, #tpu.memory_space<vmem>>, %arg3: memref<8x64xf32, #tpu.memory_space<vmem>>) attributes {dimension_semantics = [#tpu.dimension_semantics<parallel>], iteration_bounds = array<i64: 1>, scalar_prefetch = 0 : i64, scratch_operands = 0 : i64, tpu.core_type = #tpu.core_type<tc>, window_params = [{transform_indices = @transform_0, window_bounds = array<i64: 8, 128>}, {pipeline_mode = #tpu.pipeline_mode<synchronous>, transform_indices = @transform_1, window_bounds = array<i64: 4, 32, 16>}, {transform_indices = @transform_2, window_bounds = array<i64: 8, 64>}]} {
    %c0 = arith.constant 0 : index
    %c0_0 = arith.constant 0 : index
    %0 = vector.load %arg1[%c0, %c0_0] : memref<8x128xf32, #tpu.memory_space<vmem>>, vector<8x8xf32>
    %c0_1 = arith.constant 0 : index
    %c32 = arith.constant 32 : index
    %1 = vector.load %arg1[%c0_1, %c32] : memref<8x128xf32, #tpu.memory_space<vmem>>, vector<8x8xf32>
    %c0_2 = arith.constant 0 : index
    %c64 = arith.constant 64 : index
    %2 = vector.load %arg1[%c0_2, %c64] : memref<8x128xf32, #tpu.memory_space<vmem>>, vector<8x8xf32>
    %c0_3 = arith.constant 0 : index
    %c96 = arith.constant 96 : index
    %3 = vector.load %arg1[%c0_3, %c96] : memref<8x128xf32, #tpu.memory_space<vmem>>, vector<8x8xf32>
    %4 = tpu.concatenate %0, %1, %2, %3 in 1 : vector<8x8xf32>, vector<8x8xf32>, vector<8x8xf32>, vector<8x8xf32> -> vector<8x32xf32>
    %c0_4 = arith.constant 0 : index
    %c0_5 = arith.constant 0 : index
    %c0_6 = arith.constant 0 : index
    %5 = vector.load %arg2[%c0_4, %c0_5, %c0_6] : memref<4x32x16xf32, #tpu.memory_space<vmem>>, vector<1x32x16xf32>
    %6 = vector.shape_cast %5 : vector<1x32x16xf32> to vector<32x16xf32>
    %cst = arith.constant dense<0.000000e+00> : vector<8x16xf32>
    %7 = tpu.matmul %4, %6, %cst {dimension_numbers = #tpu.dot_dimension_numbers<[1], [0], [0], [1], [0, 0, 1, 1], [], []>} : vector<8x32xf32>, vector<32x16xf32>, vector<8x16xf32> -> vector<8x16xf32>
    %c0_7 = arith.constant 0 : index
    %c8 = arith.constant 8 : index
    %8 = vector.load %arg1[%c0_7, %c8] : memref<8x128xf32, #tpu.memory_space<vmem>>, vector<8x8xf32>
    %c0_8 = arith.constant 0 : index
    %c40 = arith.constant 40 : index
    %9 = vector.load %arg1[%c0_8, %c40] : memref<8x128xf32, #tpu.memory_space<vmem>>, vector<8x8xf32>
    %c0_9 = arith.constant 0 : index
    %c72 = arith.constant 72 : index
    %10 = vector.load %arg1[%c0_9, %c72] : memref<8x128xf32, #tpu.memory_space<vmem>>, vector<8x8xf32>
    %c0_10 = arith.constant 0 : index
    %c104 = arith.constant 104 : index
    %11 = vector.load %arg1[%c0_10, %c104] : memref<8x128xf32, #tpu.memory_space<vmem>>, vector<8x8xf32>
    %12 = tpu.concatenate %8, %9, %10, %11 in 1 : vector<8x8xf32>, vector<8x8xf32>, vector<8x8xf32>, vector<8x8xf32> -> vector<8x32xf32>
    %c1 = arith.constant 1 : index
    %c0_11 = arith.constant 0 : index
    %c0_12 = arith.constant 0 : index
    %13 = vector.load %arg2[%c1, %c0_11, %c0_12] : memref<4x32x16xf32, #tpu.memory_space<vmem>>, vector<1x32x16xf32>
    %14 = vector.shape_cast %13 : vector<1x32x16xf32> to vector<32x16xf32>
    %cst_13 = arith.constant dense<0.000000e+00> : vector<8x16xf32>
    %15 = tpu.matmul %12, %14, %cst_13 {dimension_numbers = #tpu.dot_dimension_numbers<[1], [0], [0], [1], [0, 0, 1, 1], [], []>} : vector<8x32xf32>, vector<32x16xf32>, vector<8x16xf32> -> vector<8x16xf32>
    %c0_14 = arith.constant 0 : index
    %c16 = arith.constant 16 : index
    %16 = vector.load %arg1[%c0_14, %c16] : memref<8x128xf32, #tpu.memory_space<vmem>>, vector<8x8xf32>
    %c0_15 = arith.constant 0 : index
    %c48 = arith.constant 48 : index
    %17 = vector.load %arg1[%c0_15, %c48] : memref<8x128xf32, #tpu.memory_space<vmem>>, vector<8x8xf32>
    %c0_16 = arith.constant 0 : index
    %c80 = arith.constant 80 : index
    %18 = vector.load %arg1[%c0_16, %c80] : memref<8x128xf32, #tpu.memory_space<vmem>>, vector<8x8xf32>
    %c0_17 = arith.constant 0 : index
    %c112 = arith.constant 112 : index
    %19 = vector.load %arg1[%c0_17, %c112] : memref<8x128xf32, #tpu.memory_space<vmem>>, vector<8x8xf32>
    %20 = tpu.concatenate %16, %17, %18, %19 in 1 : vector<8x8xf32>, vector<8x8xf32>, vector<8x8xf32>, vector<8x8xf32> -> vector<8x32xf32>
    %c2 = arith.constant 2 : index
    %c0_18 = arith.constant 0 : index
    %c0_19 = arith.constant 0 : index
    %21 = vector.load %arg2[%c2, %c0_18, %c0_19] : memref<4x32x16xf32, #tpu.memory_space<vmem>>, vector<1x32x16xf32>
    %22 = vector.shape_cast %21 : vector<1x32x16xf32> to vector<32x16xf32>
    %cst_20 = arith.constant dense<0.000000e+00> : vector<8x16xf32>
    %23 = tpu.matmul %20, %22, %cst_20 {dimension_numbers = #tpu.dot_dimension_numbers<[1], [0], [0], [1], [0, 0, 1, 1], [], []>} : vector<8x32xf32>, vector<32x16xf32>, vector<8x16xf32> -> vector<8x16xf32>
    %c0_21 = arith.constant 0 : index
    %c24 = arith.constant 24 : index
    %24 = vector.load %arg1[%c0_21, %c24] : memref<8x128xf32, #tpu.memory_space<vmem>>, vector<8x8xf32>
    %c0_22 = arith.constant 0 : index
    %c56 = arith.constant 56 : index
    %25 = vector.load %arg1[%c0_22, %c56] : memref<8x128xf32, #tpu.memory_space<vmem>>, vector<8x8xf32>
    %c0_23 = arith.constant 0 : index
    %c88 = arith.constant 88 : index
    %26 = vector.load %arg1[%c0_23, %c88] : memref<8x128xf32, #tpu.memory_space<vmem>>, vector<8x8xf32>
    %c0_24 = arith.constant 0 : index
    %c120 = arith.constant 120 : index
    %27 = vector.load %arg1[%c0_24, %c120] : memref<8x128xf32, #tpu.memory_space<vmem>>, vector<8x8xf32>
    %28 = tpu.concatenate %24, %25, %26, %27 in 1 : vector<8x8xf32>, vector<8x8xf32>, vector<8x8xf32>, vector<8x8xf32> -> vector<8x32xf32>
    %c3 = arith.constant 3 : index
    %c0_25 = arith.constant 0 : index
    %c0_26 = arith.constant 0 : index
    %29 = vector.load %arg2[%c3, %c0_25, %c0_26] : memref<4x32x16xf32, #tpu.memory_space<vmem>>, vector<1x32x16xf32>
    %30 = vector.shape_cast %29 : vector<1x32x16xf32> to vector<32x16xf32>
    %cst_27 = arith.constant dense<0.000000e+00> : vector<8x16xf32>
    %31 = tpu.matmul %28, %30, %cst_27 {dimension_numbers = #tpu.dot_dimension_numbers<[1], [0], [0], [1], [0, 0, 1, 1], [], []>} : vector<8x32xf32>, vector<32x16xf32>, vector<8x16xf32> -> vector<8x16xf32>
    %32 = tpu.concatenate %7, %15, %23, %31 in 1 : vector<8x16xf32>, vector<8x16xf32>, vector<8x16xf32>, vector<8x16xf32> -> vector<8x64xf32>
    %cst_28 = arith.constant 0.176776692 : f32
    %33 = vector.broadcast %cst_28 : f32 to vector<8x64xf32>
    %34 = arith.mulf %32, %33 : vector<8x64xf32>
    %cst_29 = arith.constant 0.000000e+00 : f32
    %35 = vector.broadcast %cst_29 : f32 to vector<8x64xf32>
    %36 = arith.maximumf %34, %35 : vector<8x64xf32>
    %c0_30 = arith.constant 0 : index
    %c0_31 = arith.constant 0 : index
    %37 = vector.load %arg3[%c0_30, %c0_31] : memref<8x64xf32, #tpu.memory_space<vmem>>, vector<8x64xf32>
    tpu.vector_store %arg3[%c0_30, %c0_31], %36 {strides = array<i32>} : memref<8x64xf32, #tpu.memory_space<vmem>>, vector<8x64xf32>,
    return
  }
  func.func @transform_0(%arg0: i32) -> (i32, i32) {
    %c0_i32 = arith.constant 0 : i32
    %c0_i32_0 = arith.constant 0 : i32
    return %arg0, %c0_i32 : i32, i32
  }
  func.func @transform_1(%arg0: i32) -> (i32, i32, i32) {
    %c0_i32 = arith.constant 0 : i32
    %c0_i32_0 = arith.constant 0 : i32
    %c0_i32_1 = arith.constant 0 : i32
    %c0_i32_2 = arith.constant 0 : i32
    return %c0_i32, %c0_i32_0, %c0_i32_1 : i32, i32, i32
  }
  func.func @transform_2(%arg0: i32) -> (i32, i32) {
    %c0_i32 = arith.constant 0 : i32
    %c0_i32_0 = arith.constant 0 : i32
    return %arg0, %c0_i32 : i32, i32
  }
}

</mosaic_0001>

<bundles_post_ra>
// kernel: tpu_custom_call.1
= control target key start
LH: loop header
LB: loop body
LE: loop exit
PB: predicated region body
PF: predicated region fallthrough
CT: control target
= control target key end

     0   :  { %s556_s13 = smov 120   ;;  %s557_s14 = smov 104   ;;  %v558_v4 = vmov 0.0|0.0   ;;  %vm559_vm0 = vmmov 0   ;;  %v560_v13 = vmov 0.0   ;;  %s704_s0 = inlined_call_operand.vmem [shape: f32[8,128], index: 0, kind: input, shape index: {}]   ;;  %s705_s1 = inlined_call_operand.vmem [shape: f32[4,32,16], index: 1, kind: input, shape index: {}]   ;;  %s706_s2 = inlined_call_operand.hbm [shape: f32[8,64], index: 2, kind: output, shape index: {}]  }
   0x1   :  { %v591_v0 = vld [vmem:[%s704_s0] sm:$0xff]  ;;  %v30_v2 = vld [vmem:[%s705_s1 + $0x8] sm:$0xff]  ;;  %v31_v3 = vld [vmem:[%s705_s1 + $0x10] sm:$0xff]  ;;  %491 = vmatprep.subr.bf16.mxu0 %v558_v4  ;;  %497 = vmatprep.subr.bf16.mxu1 %v558_v4  ;;  %s561_s28 = smov 96   ;;  %s562_s29 = smov 80  }
   0x2   :  { %v29_v1 = vld [vmem:[%s705_s1] sm:$0xff]  ;;  %107 = vrot.lane.b32.xlu1 %v591_v0, %s556_s13  ;;  %14 = vrot.lane.b32.xlu0 %v591_v0, %s557_s14  ;;  %v32_v6 = vld [vmem:[%s705_s1 + $0x18] sm:$0xff] }
   0x3   :  { %v492_v5 = vpack.c.bf16 %v30_v2, %v29_v1  ;;  %v412_v7 = vld [vmem:[%s705_s1 + $0x20] sm:$0xff]  ;;  %v413_v8 = vld [vmem:[%s705_s1 + $0x28] sm:$0xff]  ;;  %v414_v10 = vld [vmem:[%s705_s1 + $0x30] sm:$0xff]  ;;  %v495_v12 = vpack.c.bf16 %v32_v6, %v31_v3  ;;  %455 = vmatprep.mubr.msk.f32.mxu0 %vm559_vm0, %v560_v13  ;;  %466 = vmatprep.mubr.msk.f32.mxu1 %vm559_vm0, %v560_v13 }
   0x4   :  { %v498_v9 = vpack.c.bf16 %v413_v8, %v412_v7  ;;  %v415_v11 = vld [vmem:[%s705_s1 + $0x38] sm:$0xff] }
   0x5   :  { %493 = vmatpush3.bf16.msra.mxu0 %v492_v5  ;;  %v501_v14 = vpack.c.bf16 %v415_v11, %v414_v10 }
   0x6   :  { %110 = vrot.lane.b32.xlu1 %v591_v0, %s561_s28  ;;  %17 = vrot.lane.b32.xlu0 %v591_v0, %s562_s29 }
   0x7   :  { %494 = vmatprep.subr.bf16.mxu0 %v558_v4  ;;  %499 = vmatpush3.bf16.msra.mxu1 %v498_v9 }
   0x8   :  { %500 = vmatprep.subr.bf16.mxu1 %v558_v4 }
   0x9   :  { %7 = vsyncpa [#allocation3], 0  ;;  %496 = vmatpush3.bf16.msra.mxu0 %v495_v12  ;;  %s563_s30 = smov 72   ;;  %s564_s3 = smov 56   ;;  %vm23_vm1 = vcmask 64512   ;;  %v417_v19 = vld [vmem:[%s705_s1 + $0x40] sm:$0xff] }
   0xa   :  { %113 = vrot.lane.b32.xlu1 %v591_v0, %s563_s30  ;;  %20 = vrot.lane.b32.xlu0 %v591_v0, %s564_s3  ;;  %s565_s4 = smov 112   ;;  %s566_s5 = smov 48   ;;  %v418_v20 = vld [vmem:[%s705_s1 + $0x48] sm:$0xff]  ;;  %vm25_vm2 = vcmask 130048   ;;  %vm27_vm3 = vcmask 195584   ;;  %vm33_vm4 = vcmask 261120  }
   0xb   :  { %502 = vmatpush3.bf16.msra.mxu1 %v501_v14  ;;  %503 = vmatprep.subr.bf16.mxu0 %v558_v4  ;;  %s567_s6 = smov 64   ;;  %s568_s7 = smov 88   ;;  %v504_v22 = vpack.c.bf16 %v418_v20, %v417_v19  ;;  %v422_v23 = vld [vmem:[%s705_s1 + $0x60] sm:$0xff]  ;;  %v423_v27 = vld [vmem:[%s705_s1 + $0x68] sm:$0xff]  ;;  %v419_v28 = vld [vmem:[%s705_s1 + $0x50] sm:$0xff]  ;;  %vm391_vm5 = vcmask 392192  }
   0xc   :  { %509 = vmatprep.subr.bf16.mxu1 %v558_v4  ;;  %s569_s8 = smov 32   ;;  %s570_s9 = smov 40   ;;  %v420_v29 = vld [vmem:[%s705_s1 + $0x58] sm:$0xff]  ;;  %v510_v32 = vpack.c.bf16 %v423_v27, %v422_v23  ;;  %v424_v37 = vld [vmem:[%s705_s1 + $0x70] sm:$0xff]  ;;  %vm395_vm6 = vcmask 523264  }
   0xd   :  { %v507_v33 = vpack.c.bf16 %v420_v29, %v419_v28  ;;  %v425_v38 = vld [vmem:[%s705_s1 + $0x78] sm:$0xff]  ;;  %s571_s1 = smov 16   ;;  %s572_s25 = smov [#allocation2]  }
   0xe   :  { %200 = vrot.lane.b32.xlu1 %v591_v0, %s565_s4  ;;  %116 = vrot.lane.b32.xlu0 %v591_v0, %s566_s5  ;;  %v513_v40 = vpack.c.bf16 %v425_v38, %v424_v37  ;;  %s403_s26 = sshll.u32 %s572_s25, 4  ;;  %s404_s26 = int_to_ptr.vmem [resolvable:$true] %s403_s26 }
   0xf   :  { %s532_s27 = scalar_lea.vmem %s404_s26, 128  ;;  %p537_p1 = scmp.lt.s32.totalorder %s404_s26, %s404_s26 }
  0x10   :  { %p533_p0 = scmp.ne.s32.totalorder %s404_s26, %s532_s27  ;;  %p538_p2 = scmp.lt.s32.totalorder %s532_s27, %s532_s27 }
  0x12   :  { %206 = vrot.lane.b32.xlu1 %v591_v0, %s567_s6  ;;  %203 = vrot.lane.b32.xlu0 %v591_v0, %s568_s7  ;;  %p539_p3 = por %p538_p2, %p537_p1 }
  0x14   :  { %p540_p4 = pnand %p539_p3, %p533_p0 }
  0x16   :  { %293 = vrot.lane.b32.xlu1 %v591_v0, %s569_s8  ;;  %209 = vrot.lane.b32.xlu0 %v591_v0, %s570_s9 }
  0x74   :  { %v108_v15 = vpop.permute.xlu1 %107  ;;  %v15_v16 = vpop.permute.xlu0 %14 }
  0x75   :  { %v24_v21 = vsel %vm23_vm1, %v591_v0, %v15_v16 }
  0x78   :  { %v111_v17 = vpop.permute.xlu1 %110  ;;  %v18_v18 = vpop.permute.xlu0 %17 }
  0x79   :  { %v26_v24 = vsel %vm25_vm2, %v24_v21, %v18_v18  ;;  %v119_v31 = vsel %vm23_vm1, %v108_v15, %v111_v17  ;;  %v296_v44 = vsel %vm23_vm1, %v15_v16, %v18_v18 }
  0x7c   :  { %v114_v25 = vpop.permute.xlu1 %113  ;;  %v21_v26 = vpop.permute.xlu0 %20 }
  0x7d   :  { %v28_v30 = vsel %vm27_vm3, %v26_v24, %v21_v26  ;;  %v120_v34 = vsel %vm25_vm2, %v119_v31, %v114_v25  ;;  %v297_v45 = vsel %vm25_vm2, %v296_v44, %v21_v26 }
  0x7e   :  { %456 = vmatmul.mubr.msk.f32.vlgmr.msra.gmra.mrb[0].mxu0 %vm33_vm4, %v28_v30 }
  0x7f   :  { %505 = vmatpush3.bf16.msra.mxu0 %v504_v22  ;;  %477 = vmatprep.mubr.msk.f32.mxu0 %vm559_vm0, %v560_v13 }
  0x80   :  { %v201_v35 = vpop.permute.xlu1 %200  ;;  %v117_v36 = vpop.permute.xlu0 %116  ;;  %506 = vmatprep.subr.bf16.mxu0 %v558_v4 }
  0x81   :  { %v121_v39 = vsel %vm27_vm3, %v120_v34, %v117_v36 }
  0x82   :  { %467 = vmatmul.mubr.msk.f32.vlgmr.msra.gmra.mrb[0].mxu1 %vm33_vm4, %v121_v39 }
  0x83   :  { %511 = vmatpush3.bf16.msra.mxu1 %v510_v32  ;;  %508 = vmatpush3.bf16.msra.mxu0 %v507_v33 }
  0x84   :  { %v207_v41 = vpop.permute.xlu1 %206  ;;  %v204_v42 = vpop.permute.xlu0 %203  ;;  %512 = vmatprep.subr.bf16.mxu1 %v558_v4  ;;  %488 = vmatprep.mubr.msk.f32.mxu1 %vm559_vm0, %v560_v13 }
  0x85   :  { %v212_v43 = vsel %vm23_vm1, %v201_v35, %v204_v42 }
  0x86   :  { %v213_v47 = vsel %vm25_vm2, %v212_v43, %v207_v41 }
  0x87   :  { %514 = vmatpush3.bf16.msra.mxu1 %v513_v40 }
  0x88   :  { %v294_v46 = vpop.permute.xlu1 %293  ;;  %v210_v48 = vpop.permute.xlu0 %209 }
  0x89   :  { %v298_v49 = vsel %vm27_vm3, %v297_v45, %v294_v46  ;;  %v214_v50 = vsel %vm27_vm3, %v213_v47, %v210_v48 }
  0x8a   :  { %478 = vmatmul.mubr.msk.f32.vlgmr.msra.gmra.mrb[2].mxu0 %vm33_vm4, %v214_v50  ;;  %489 = vmatmul.mubr.msk.f32.vlgmr.msra.gmra.mrb[2].mxu1 %vm33_vm4, %v298_v49 }
 0x151   :  { %v103_v51 = vpop.f32.mrb[0].mxu0 }
 0x152   :  { %v457_v52 = vpop.f32.mrb[1].mxu0 }
 0x155   :  { %v196_v53 = vpop.f32.mrb[0].mxu1 }
 0x156   :  { %378 = vrot.lane.b32.xlu0 %v196_v53, %s571_s1  ;;  %v468_v54 = vpop.f32.mrb[1].mxu1 }
 0x15d   :  { %v289_v55 = vpop.f32.mrb[2].mxu0  ;;  %v373_v56 = vpop.f32.mrb[2].mxu1 }
 0x15e   :  { %386 = vrot.lane.b32.xlu0 %v373_v56, %s566_s5  ;;  %v490_v57 = vpop.f32.mrb[3].mxu1  ;;  %382 = vrot.lane.b32.xlu1 %v289_v55, %s569_s8  ;;  %v479_v58 = vpop.f32.mrb[3].mxu0 }
 0x1c8   :  { %v379_v59 = vpop.permute.xlu0 %378 }
 0x1c9   :  { %v389_v60 = vsel %vm25_vm2, %v103_v51, %v379_v59 }
 0x1d0   :  { %v383_v61 = vpop.permute.xlu1 %382  ;;  %v387_v62 = vpop.permute.xlu0 %386 }
 0x1d1   :  { %v390_v63 = vsel %vm33_vm4, %v389_v60, %v383_v61 }
 0x1d2   :  { %v392_v0 = vsel %vm391_vm5, %v390_v63, %v387_v62 }
 0x1d3   :  { %v393_v1 = vmul.f32 0.17677669, %v392_v0 }
 0x1d5   :  { %v394_v2 = vmax.f32 %v393_v1, 0.0 }
 0x1d7   :  { %396 = vst.msk [vmem:[#allocation2] sm:$0xff] %vm395_vm6, %v394_v2 }
 0x1d8   :  { %543 = shalt.err (!%p540_p4)
}
 0x1d9   :  { %s544_s30 = scalar_lea.hbm %s706_s2, 128 }
 0x1da   :  { %p545_p5 = scmp.ne.s32.totalorder %s706_s2, %s544_s30  ;;  %p548_p6 = scmp.lt.u32.totalorder %s544_s30, %s706_s2 }
 0x1dc   :  { %p550_p7 = pnand %p548_p6, %p545_p5 }
 0x1de   :  { %553 = shalt.err (!%p550_p7)
}
 0x1df   :  { %406 = dma.vmem_to_hbm [thread:$0]  %s404_s26, 128, %s706_s2, [#allocation3]  }
 0x1e0   :  { %554 = dma.done.wait [#allocation3], 128  }
 0x1e1   :  { %555 = vsyncadd [#allocation3], 4294967168 }
 0x1e2   :  { %410 = vsyncpa [#allocation3], 1 }

</bundles_post_ra>
